<compile_context>
chip_gen: v7x
topology: tpu7x:2x2x1
jax: 0.10.0
libtpu: 0.0.40
codegen_flags: <defaults>
</compile_context>

<pallas_src>
import functools

import jax
import jax.numpy as jnp
from jax.experimental import pallas as pl
from jax.experimental.pallas import tpu as pltpu


# ----------------------------------------------------------------------------
# Fused loss kernel (one grid step == one decoder layer)
# ----------------------------------------------------------------------------
_NUM_OUT = 8  # [loss_ce, class_error, cardinality_error, loss_bbox, loss_giou,
              #  loss_feature, pad, pad]


def _sum_all(x):
    """Sum a 2-D value to a scalar via keepdims reductions."""
    s = jnp.sum(x, axis=-1, keepdims=True)
    s = jnp.sum(s, axis=-2, keepdims=True)
    return s[0, 0]


def _fused_loss_kernel(logits_ref, tclass_ref, tlen_ref,
                       srcb_ref, tgtb_ref, srcf_ref, tgtf_ref, out_ref,
                       *, num_classes, eos_coef, num_boxes):
    f32 = jnp.float32
    layer = pl.program_id(0)
    C = num_classes + 1

    # ------------------------------------------------------------------
    # Classification: weighted cross-entropy + top-1 class_error.
    # Layout [C, B, Q]: queries on lanes, class dim unrolled (C is tiny).
    # ------------------------------------------------------------------
    logits = logits_ref[...].astype(f32)          # [C, B, Q]
    tclass = tclass_ref[...]                      # [B, Q] int32
    B, Q = tclass.shape

    rows = [logits[c] for c in range(C)]          # C x [B, Q]
    mx = rows[0]
    for c in range(1, C):
        mx = jnp.maximum(mx, rows[c])
    sumexp = jnp.zeros_like(mx)
    for c in range(C):
        sumexp = sumexp + jnp.exp(rows[c] - mx)
    lse = mx + jnp.log(sumexp)                    # log-sum-exp, [B, Q]

    weights = [1.0] * num_classes + [float(eos_coef)]   # empty_weight buffer
    tgt_logit = jnp.zeros_like(mx)
    w_gather = jnp.zeros_like(mx)
    ties_before = jnp.zeros_like(mx)              # classes < target attaining max
    for c in range(C):
        sel = (tclass == c).astype(f32)
        tgt_logit = tgt_logit + sel * rows[c]
        w_gather = w_gather + sel * weights[c]
        ties_before = ties_before + (rows[c] >= mx).astype(f32) * (tclass > c).astype(f32)

    num = _sum_all(w_gather * (lse - tgt_logit))
    den = _sum_all(w_gather)
    out_ref[layer, 0] = num / den                 # loss_ce (weighted mean)

    # class_error = 100 - top-1 accuracy over matched queries
    matched = (tclass != num_classes).astype(f32)
    correct = matched * (tgt_logit >= mx).astype(f32) * (ties_before == 0.0).astype(f32)
    n_match = _sum_all(matched)
    acc = 100.0 * _sum_all(correct) / jnp.maximum(n_match, 1.0)  # empty -> acc 0
    out_ref[layer, 1] = 100.0 - acc

    # ------------------------------------------------------------------
    # Cardinality error: | #(argmax != no-object) - #targets |, mean over batch.
    # argmax != C-1  <=>  max(other classes) >= last (first-index tie-break).
    # ------------------------------------------------------------------
    others = rows[0]
    for c in range(1, C - 1):
        others = jnp.maximum(others, rows[c])
    not_empty = (others >= rows[C - 1]).astype(f32)            # [B, Q]
    card_pred = jnp.sum(not_empty, axis=-1, keepdims=True)     # [B, 1]
    tlen = tlen_ref[...].astype(f32)                           # [B, 1]
    out_ref[layer, 2] = _sum_all(jnp.abs(card_pred - tlen)) / B

    # ------------------------------------------------------------------
    # Boxes: L1 + (1 - GIoU) on matched pairs.  Layout [4, N]: boxes on lanes.
    # ------------------------------------------------------------------
    s = srcb_ref[...].astype(f32)                 # [4, N] cxcywh
    t = tgtb_ref[...].astype(f32)
    out_ref[layer, 3] = _sum_all(jnp.abs(s - t)) / num_boxes   # loss_bbox

    eps = f32(1e-7)
    scx, scy, sw, sh = s[0:1], s[1:2], s[2:3], s[3:4]
    tcx, tcy, tw, th = t[0:1], t[1:2], t[2:3], t[3:4]
    sx0, sy0 = scx - 0.5 * sw, scy - 0.5 * sh
    sx1, sy1 = scx + 0.5 * sw, scy + 0.5 * sh
    tx0, ty0 = tcx - 0.5 * tw, tcy - 0.5 * th
    tx1, ty1 = tcx + 0.5 * tw, tcy + 0.5 * th
    area_s = (sx1 - sx0) * (sy1 - sy0)
    area_t = (tx1 - tx0) * (ty1 - ty0)
    iw = jnp.maximum(jnp.minimum(sx1, tx1) - jnp.maximum(sx0, tx0), 0.0)
    ih = jnp.maximum(jnp.minimum(sy1, ty1) - jnp.maximum(sy0, ty0), 0.0)
    inter = iw * ih
    union = area_s + area_t - inter
    iou = inter / jnp.maximum(union, eps)
    ew = jnp.maximum(jnp.maximum(sx1, tx1) - jnp.minimum(sx0, tx0), 0.0)
    eh = jnp.maximum(jnp.maximum(sy1, ty1) - jnp.minimum(sy0, ty0), 0.0)
    earea = ew * eh
    giou = iou - (earea - union) / jnp.maximum(earea, eps)     # [1, N]
    out_ref[layer, 4] = _sum_all(1.0 - giou) / num_boxes       # loss_giou

    # ------------------------------------------------------------------
    # Feature: MSE between L2-normalized features ([N, D], feature on lanes).
    # ------------------------------------------------------------------
    sf = srcf_ref[...].astype(f32)
    tf = tgtf_ref[...].astype(f32)
    sn = sf / jnp.maximum(jnp.sqrt(jnp.sum(sf * sf, axis=-1, keepdims=True)), 1e-12)
    tn = tf / jnp.maximum(jnp.sqrt(jnp.sum(tf * tf, axis=-1, keepdims=True)), 1e-12)
    d = sn - tn
    out_ref[layer, 5] = _sum_all(d * d) / num_boxes            # loss_feature

    out_ref[layer, 6] = f32(0.0)
    out_ref[layer, 7] = f32(0.0)


def fused_losses(logits_t, target_classes, tlen, src_boxes_t, tgt_boxes_t,
                 src_feats, tgt_feats, *, num_classes, eos_coef, num_boxes):
    """One pallas_call: grid over decoder layers, scalar losses to SMEM."""
    L, C, B, Q = logits_t.shape
    N = src_boxes_t.shape[-1]
    D = src_feats.shape[-1]
    kernel = functools.partial(_fused_loss_kernel, num_classes=int(num_classes),
                               eos_coef=float(eos_coef), num_boxes=float(num_boxes))
    return pl.pallas_call(
        kernel,
        grid=(L,),
        in_specs=[
            pl.BlockSpec((None, C, B, Q), lambda l: (l, 0, 0, 0)),  # per-layer logits [C,B,Q]
            pl.BlockSpec((None, B, Q), lambda l: (l, 0, 0)),        # per-layer target classes
            pl.BlockSpec((B, 1), lambda l: (0, 0)),                 # target lengths (layer-invariant)
            pl.BlockSpec((None, 4, N), lambda l: (l, 0, 0)),        # matched src boxes [4,N]
            pl.BlockSpec((None, 4, N), lambda l: (0, 0, 0)),        # target boxes (layer-invariant)
            pl.BlockSpec((None, N, D), lambda l: (l, 0, 0)),        # matched src features [N,D]
            pl.BlockSpec((None, N, D), lambda l: (0, 0, 0)),        # target features (layer-invariant)
        ],
        out_shape=jax.ShapeDtypeStruct((L, _NUM_OUT), jnp.float32),
        out_specs=pl.BlockSpec(memory_space=pltpu.MemorySpace.SMEM),
        # TODO(synk): on v7x a per-layer blocked SMEM out_spec + "parallel"
        # would split decoder layers across the two TensorCores; keeping the
        # resident-SMEM output + "arbitrary" here for maximum portability.
        compiler_params=pltpu.CompilerParams(dimension_semantics=("arbitrary",)),
    )(logits_t, target_classes, tlen, src_boxes_t, tgt_boxes_t, src_feats, tgt_feats)


# ----------------------------------------------------------------------------
# JAX glue: box utilities + vectorized deterministic matcher
# ----------------------------------------------------------------------------
def box_cxcywh_to_xyxy(b):
    cx, cy, w, h = jnp.split(b, 4, axis=-1)
    return jnp.concatenate([cx - 0.5 * w, cy - 0.5 * h, cx + 0.5 * w, cy + 0.5 * h], axis=-1)


def generalized_box_iou_pairwise(b1, b2):
    eps = 1e-7
    area1 = (b1[:, 2] - b1[:, 0]) * (b1[:, 3] - b1[:, 1])
    area2 = (b2[:, 2] - b2[:, 0]) * (b2[:, 3] - b2[:, 1])
    lt = jnp.maximum(b1[:, None, :2], b2[None, :, :2])
    rb = jnp.minimum(b1[:, None, 2:], b2[None, :, 2:])
    wh = jnp.clip(rb - lt, 0.0)
    inter = wh[..., 0] * wh[..., 1]
    union = area1[:, None] + area2[None, :] - inter
    iou = inter / jnp.maximum(union, eps)
    lt_e = jnp.minimum(b1[:, None, :2], b2[None, :, :2])
    rb_e = jnp.maximum(b1[:, None, 2:], b2[None, :, 2:])
    wh_e = jnp.clip(rb_e - lt_e, 0.0)
    area_e = wh_e[..., 0] * wh_e[..., 1]
    return iou - (area_e - union) / jnp.maximum(area_e, eps)


def _greedy_assign_jax(cost):
    """Column-wise greedy assignment. cost: [Q, T] -> matched query per target [T]."""
    # TODO(synk): exact Hungarian assignment (scipy linear_sum_assignment) has no
    # clean JAX/Pallas equivalent; a deterministic greedy matching is used instead.
    Qn, Tn = cost.shape

    def body(t, carry):
        taken, src = carry
        col = jnp.where(taken, jnp.float32(1e30), cost[:, t])
        q = jnp.argmin(col).astype(jnp.int32)
        return taken.at[q].set(True), src.at[t].set(q)

    taken0 = jnp.zeros((Qn,), jnp.bool_)
    src0 = jnp.zeros((Tn,), jnp.int32)
    _, src = jax.lax.fori_loop(0, Tn, body, (taken0, src0))
    return src


class GreedyMatcher:
    """Deterministic stand-in for the DETR HungarianMatcher (same cost terms)."""

    def __init__(self, cost_class=1.0, cost_bbox=5.0, cost_giou=2.0):
        self.cost_class, self.cost_bbox, self.cost_giou = cost_class, cost_bbox, cost_giou

    def _cost_single(self, logits_b, boxes_b, labels_b, tboxes_b):
        prob = jax.nn.softmax(logits_b, axis=-1)                  # [Q, C]
        c_cls = -prob[:, labels_b]                                # [Q, T]
        c_bbox = jnp.sum(jnp.abs(boxes_b[:, None, :] - tboxes_b[None, :, :]), axis=-1)
        c_giou = -generalized_box_iou_pairwise(box_cxcywh_to_xyxy(boxes_b),
                                               box_cxcywh_to_xyxy(tboxes_b))
        return self.cost_class * c_cls + self.cost_bbox * c_bbox + self.cost_giou * c_giou

    def match_batched(self, logits, boxes, labels, tboxes):
        """[B,Q,C],[B,Q,4],[B,T],[B,T,4] -> matched query index per target [B,T]."""
        def per_batch(lg, bx, lb, tb):
            return _greedy_assign_jax(self._cost_single(lg, bx, lb, tb))
        return jax.vmap(per_batch)(logits, boxes, labels.astype(jnp.int32), tboxes)

    def __call__(self, outputs, targets):
        logits, boxes = outputs['pred_logits'], outputs['pred_boxes']
        labels = jnp.stack([t['labels'] for t in targets], 0).astype(jnp.int32)
        tboxes = jnp.stack([t['boxes'] for t in targets], 0)
        src = self.match_batched(logits, boxes, labels, tboxes)
        col = jnp.arange(labels.shape[1], dtype=jnp.int32)
        return [(src[b], col) for b in range(src.shape[0])]


# ----------------------------------------------------------------------------
# The criterion (mirrors the PyTorch module forward semantics)
# ----------------------------------------------------------------------------
class SiamDETRCriterionPallas:
    def __init__(self, matcher, aux_loss, losses, eos_coef=0.1):
        self.matcher = matcher
        self.eos_coef = float(eos_coef)
        self.losses = list(losses)
        self.aux_loss = aux_loss
        self.num_classes = 2
        # deterministic "buffer": ones(num_classes+1), last = eos_coef
        self.empty_weight = jnp.ones((self.num_classes + 1,), jnp.float32).at[-1].set(eos_coef)
        self._jit_forward = jax.jit(self._forward_impl)

    # ---- jitted path: matcher + gathers + fused Pallas kernel -------------
    def _forward_impl(self, logits_all, boxes_all, feats_all, gt_feature, labels, tboxes):
        L, B, Q, C = logits_all.shape
        P = labels.shape[1]
        D = feats_all.shape[-1]
        N = B * P                      # num_boxes = bs * num_patches (reference semantics)

        # matcher, vectorized over decoder layers and batch
        src_idx = jax.vmap(self.matcher.match_batched, in_axes=(0, 0, None, None))(
            logits_all, boxes_all, labels, tboxes)                         # [L, B, P]

        # target_classes[l,b,q] = matched label, else num_classes (no-object)
        def scatter_tc(src_b, labels_b):
            tc = jnp.full((Q,), self.num_classes, jnp.int32)
            return tc.at[src_b].set(labels_b.astype(jnp.int32))
        target_classes = jax.vmap(jax.vmap(scatter_tc, in_axes=(0, 0)), in_axes=(0, None))(
            src_idx, labels)                                               # [L, B, Q]

        # gather matched predictions per layer
        def gather_layer(x_l, s_l):                                        # [B,Q,F],[B,P]
            return jax.vmap(lambda xb, sb: xb[sb])(x_l, s_l)               # [B,P,F]
        src_boxes = jax.vmap(gather_layer)(boxes_all, src_idx).reshape(L, N, 4)
        src_feats = jax.vmap(gather_layer)(feats_all, src_idx).reshape(L, N, D)

        # lane-dense layouts for the fused kernel
        logits_t = jnp.transpose(logits_all, (0, 3, 1, 2))                 # [L, C, B, Q]
        src_boxes_t = jnp.transpose(src_boxes, (0, 2, 1))                  # [L, 4, N]
        # greedy matcher emits target (column) order = arange(P) per image, so
        # the target side is identical across decoder layers.
        tgt_boxes_t = jnp.transpose(tboxes.reshape(1, N, 4), (0, 2, 1))    # [1, 4, N]
        tgt_feats = gt_feature.reshape(1, N, D)                            # [1, N, D]
        tlen = jnp.full((B, 1), float(P), jnp.float32)

        out = fused_losses(logits_t, target_classes, tlen, src_boxes_t, tgt_boxes_t,
                           src_feats, tgt_feats, num_classes=self.num_classes,
                           eos_coef=self.eos_coef, num_boxes=N)            # [L, 8]
        return out, src_idx

    def _row_to_dict(self, row, log):
        d = {}
        for loss in self.losses:
            if loss == 'labels':
                d['loss_ce'] = row[0]
                if log:
                    d['class_error'] = row[1]
            elif loss == 'cardinality':
                d['cardinality_error'] = row[2]
            elif loss == 'boxes':
                d['loss_bbox'] = row[3]
                d['loss_giou'] = row[4]
            elif loss == 'feature':
                d['loss_feature'] = row[5]
            else:
                raise AssertionError(f'do you really want to compute {loss} loss?')
        return d

    def forward(self, outputs, targets):
        # Stack main + aux decoder layers along a leading axis (layer 0 = main).
        layer_list = [outputs] + list(outputs.get('aux_outputs', []))
        logits_all = jnp.stack([o['pred_logits'] for o in layer_list], axis=0)
        boxes_all = jnp.stack([o['pred_boxes'] for o in layer_list], axis=0)
        feats_all = jnp.stack([o['pred_feature'] for o in layer_list], axis=0)
        # TODO(synk): gt_feature is assumed identical for all decoder layers (true
        # for SiamDETR) and targets must share a common padded size P per image.
        gt_feature = outputs['gt_feature']
        labels = jnp.stack([t['labels'] for t in targets], axis=0).astype(jnp.int32)
        tboxes = jnp.stack([t['boxes'] for t in targets], axis=0)

        out, src_idx = self._jit_forward(logits_all, boxes_all, feats_all,
                                         gt_feature, labels, tboxes)

        losses = self._row_to_dict(out[0], log=True)
        for i in range(len(layer_list) - 1):
            d = self._row_to_dict(out[i + 1], log=False)
            losses.update({k + f'_{i}': v for k, v in d.items()})

        # mirror the reference: returned indices correspond to the last matcher
        # invocation (last aux layer if aux outputs exist, else the main layer).
        B, P = labels.shape
        col = jnp.arange(P, dtype=jnp.int32)
        indices = [(src_idx[len(layer_list) - 1, b], col) for b in range(B)]
        return losses, indices

    __call__ = forward


# ----------------------------------------------------------------------------
if __name__ == "__main__":
    key = jax.random.PRNGKey(0)
    B, Q, P, D, C1 = 2, 8, 4, 32, 3   # batch, queries, targets/img, feat dim, classes+1
    ks = jax.random.split(key, 10)

    pred_logits = jax.random.normal(ks[0], (B, Q, C1), jnp.float32)
    pred_boxes = jax.nn.sigmoid(jax.random.normal(ks[1], (B, Q, 4), jnp.float32))
    pred_feature = jax.random.normal(ks[2], (B, Q, D), jnp.float32)
    gt_feature = jax.random.normal(ks[3], (B * P, D), jnp.float32)

    labels = jax.random.randint(ks[4], (B, P), 0, 2)
    t_cxcy = jax.random.uniform(ks[5], (B, P, 2), minval=0.3, maxval=0.7)
    t_wh = jax.random.uniform(ks[6], (B, P, 2), minval=0.1, maxval=0.3)
    tgt_boxes = jnp.concatenate([t_cxcy, t_wh], axis=-1)
    targets = [{'labels': labels[b], 'boxes': tgt_boxes[b]} for b in range(B)]

    aux_outputs = [{
        'pred_logits': jax.random.normal(ks[7], (B, Q, C1), jnp.float32),
        'pred_boxes': jax.nn.sigmoid(jax.random.normal(ks[8], (B, Q, 4), jnp.float32)),
        'pred_feature': jax.random.normal(ks[9], (B, Q, D), jnp.float32),
        'gt_feature': gt_feature,
    }]
    outputs = {'pred_logits': pred_logits, 'pred_boxes': pred_boxes,
               'pred_feature': pred_feature, 'gt_feature': gt_feature,
               'aux_outputs': aux_outputs}

    criterion = SiamDETRCriterionPallas(
        matcher=GreedyMatcher(), aux_loss=True,
        losses=['labels', 'cardinality', 'boxes', 'feature'], eos_coef=0.1)

    losses, indices = criterion.forward(outputs, targets)
    jax.block_until_ready(losses)
    jax.block_until_ready(indices)

    for k, v in losses.items():
        if not bool(jnp.isfinite(v)):
            raise RuntimeError(f"non-finite loss {k}: {v}")

    print("KERNEL_OK")
</pallas_src>

<mosaic_0001>
module attributes {stable_mosaic.version = 11 : i64} {
  func.func @_fused_loss_kernel(%arg0: i32, %arg1: memref<1x3x2x8xf32, #tpu.memory_space<vmem>>, %arg2: memref<1x2x8xi32, #tpu.memory_space<vmem>>, %arg3: memref<2x1xf32, #tpu.memory_space<vmem>>, %arg4: memref<1x4x8xf32, #tpu.memory_space<vmem>>, %arg5: memref<1x4x8xf32, #tpu.memory_space<vmem>>, %arg6: memref<1x8x32xf32, #tpu.memory_space<vmem>>, %arg7: memref<1x8x32xf32, #tpu.memory_space<vmem>>, %arg8: memref<2x8xf32, #tpu.memory_space<smem>>) attributes {dimension_semantics = [#tpu.dimension_semantics<arbitrary>], iteration_bounds = array<i64: 2>, scalar_prefetch = 0 : i64, scratch_operands = 0 : i64, tpu.core_type = #tpu.core_type<tc>, window_params = [{transform_indices = @transform_0, window_bounds = array<i64: 1, 3, 2, 8>}, {transform_indices = @transform_1, window_bounds = array<i64: 1, 2, 8>}, {pipeline_mode = #tpu.pipeline_mode<synchronous>, transform_indices = @transform_2, window_bounds = array<i64: 2, 1>}, {transform_indices = @transform_3, window_bounds = array<i64: 1, 4, 8>}, {pipeline_mode = #tpu.pipeline_mode<synchronous>, transform_indices = @transform_4, window_bounds = array<i64: 1, 4, 8>}, {transform_indices = @transform_5, window_bounds = array<i64: 1, 8, 32>}, {pipeline_mode = #tpu.pipeline_mode<synchronous>, transform_indices = @transform_6, window_bounds = array<i64: 1, 8, 32>}, {transform_indices = @transform_7, window_bounds = array<i64: 2, 8>}]} {
    %c0 = arith.constant 0 : index
    %c0_0 = arith.constant 0 : index
    %c0_1 = arith.constant 0 : index
    %c0_2 = arith.constant 0 : index
    %0 = vector.load %arg1[%c0, %c0_0, %c0_1, %c0_2] : memref<1x3x2x8xf32, #tpu.memory_space<vmem>>, vector<1x3x2x8xf32>
    %1 = vector.shape_cast %0 : vector<1x3x2x8xf32> to vector<3x2x8xf32>
    %c0_3 = arith.constant 0 : index
    %c0_4 = arith.constant 0 : index
    %c0_5 = arith.constant 0 : index
    %2 = vector.load %arg2[%c0_3, %c0_4, %c0_5] : memref<1x2x8xi32, #tpu.memory_space<vmem>>, vector<1x2x8xi32>
    %3 = vector.shape_cast %2 : vector<1x2x8xi32> to vector<2x8xi32>
    %4 = vector.extract_strided_slice %1 {offsets = [0, 0, 0], sizes = [1, 2, 8], strides = [1, 1, 1]} : vector<3x2x8xf32> to vector<1x2x8xf32>
    %5 = vector.shape_cast %4 : vector<1x2x8xf32> to vector<2x8xf32>
    %6 = vector.extract_strided_slice %1 {offsets = [1, 0, 0], sizes = [1, 2, 8], strides = [1, 1, 1]} : vector<3x2x8xf32> to vector<1x2x8xf32>
    %7 = vector.shape_cast %6 : vector<1x2x8xf32> to vector<2x8xf32>
    %8 = vector.extract_strided_slice %1 {offsets = [2, 0, 0], sizes = [1, 2, 8], strides = [1, 1, 1]} : vector<3x2x8xf32> to vector<1x2x8xf32>
    %9 = vector.shape_cast %8 : vector<1x2x8xf32> to vector<2x8xf32>
    %10 = arith.maximumf %5, %7 : vector<2x8xf32>
    %11 = arith.maximumf %10, %9 : vector<2x8xf32>
    %cst = arith.constant 0.000000e+00 : f32
    %12 = vector.broadcast %cst : f32 to vector<2x8xf32>
    %13 = arith.subf %5, %11 : vector<2x8xf32>
    %14 = math.exp %13 : vector<2x8xf32>
    %15 = arith.addf %12, %14 : vector<2x8xf32>
    %16 = arith.subf %7, %11 : vector<2x8xf32>
    %17 = math.exp %16 : vector<2x8xf32>
    %18 = arith.addf %15, %17 : vector<2x8xf32>
    %19 = arith.subf %9, %11 : vector<2x8xf32>
    %20 = math.exp %19 : vector<2x8xf32>
    %21 = arith.addf %18, %20 : vector<2x8xf32>
    %22 = math.log %21 : vector<2x8xf32>
    %23 = arith.addf %11, %22 : vector<2x8xf32>
    %cst_6 = arith.constant 0.000000e+00 : f32
    %24 = vector.broadcast %cst_6 : f32 to vector<2x8xf32>
    %cst_7 = arith.constant 0.000000e+00 : f32
    %25 = vector.broadcast %cst_7 : f32 to vector<2x8xf32>
    %cst_8 = arith.constant 0.000000e+00 : f32
    %26 = vector.broadcast %cst_8 : f32 to vector<2x8xf32>
    %c0_i32 = arith.constant 0 : i32
    %27 = vector.broadcast %c0_i32 : i32 to vector<2x8xi32>
    %28 = arith.cmpi eq, %3, %27 : vector<2x8xi32>
    %29 = arith.extui %28 : vector<2x8xi1> to vector<2x8xi32>
    %30 = arith.sitofp %29 : vector<2x8xi32> to vector<2x8xf32>
    %31 = arith.mulf %30, %5 : vector<2x8xf32>
    %32 = arith.addf %24, %31 : vector<2x8xf32>
    %cst_9 = arith.constant 1.000000e+00 : f32
    %33 = vector.broadcast %cst_9 : f32 to vector<2x8xf32>
    %34 = arith.mulf %30, %33 : vector<2x8xf32>
    %35 = arith.addf %25, %34 : vector<2x8xf32>
    %36 = arith.cmpf oge, %5, %11 : vector<2x8xf32>
    %37 = arith.extui %36 : vector<2x8xi1> to vector<2x8xi32>
    %38 = arith.sitofp %37 : vector<2x8xi32> to vector<2x8xf32>
    %c0_i32_10 = arith.constant 0 : i32
    %39 = vector.broadcast %c0_i32_10 : i32 to vector<2x8xi32>
    %40 = arith.cmpi sgt, %3, %39 : vector<2x8xi32>
    %41 = arith.extui %40 : vector<2x8xi1> to vector<2x8xi32>
    %42 = arith.sitofp %41 : vector<2x8xi32> to vector<2x8xf32>
    %43 = arith.mulf %38, %42 : vector<2x8xf32>
    %44 = arith.addf %26, %43 : vector<2x8xf32>
    %c1_i32 = arith.constant 1 : i32
    %45 = vector.broadcast %c1_i32 : i32 to vector<2x8xi32>
    %46 = arith.cmpi eq, %3, %45 : vector<2x8xi32>
    %47 = arith.extui %46 : vector<2x8xi1> to vector<2x8xi32>
    %48 = arith.sitofp %47 : vector<2x8xi32> to vector<2x8xf32>
    %49 = arith.mulf %48, %7 : vector<2x8xf32>
    %50 = arith.addf %32, %49 : vector<2x8xf32>
    %cst_11 = arith.constant 1.000000e+00 : f32
    %51 = vector.broadcast %cst_11 : f32 to vector<2x8xf32>
    %52 = arith.mulf %48, %51 : vector<2x8xf32>
    %53 = arith.addf %35, %52 : vector<2x8xf32>
    %54 = arith.cmpf oge, %7, %11 : vector<2x8xf32>
    %55 = arith.extui %54 : vector<2x8xi1> to vector<2x8xi32>
    %56 = arith.sitofp %55 : vector<2x8xi32> to vector<2x8xf32>
    %c1_i32_12 = arith.constant 1 : i32
    %57 = vector.broadcast %c1_i32_12 : i32 to vector<2x8xi32>
    %58 = arith.cmpi sgt, %3, %57 : vector<2x8xi32>
    %59 = arith.extui %58 : vector<2x8xi1> to vector<2x8xi32>
    %60 = arith.sitofp %59 : vector<2x8xi32> to vector<2x8xf32>
    %61 = arith.mulf %56, %60 : vector<2x8xf32>
    %62 = arith.addf %44, %61 : vector<2x8xf32>
    %c2_i32 = arith.constant 2 : i32
    %63 = vector.broadcast %c2_i32 : i32 to vector<2x8xi32>
    %64 = arith.cmpi eq, %3, %63 : vector<2x8xi32>
    %65 = arith.extui %64 : vector<2x8xi1> to vector<2x8xi32>
    %66 = arith.sitofp %65 : vector<2x8xi32> to vector<2x8xf32>
    %67 = arith.mulf %66, %9 : vector<2x8xf32>
    %68 = arith.addf %50, %67 : vector<2x8xf32>
    %cst_13 = arith.constant 1.000000e-01 : f32
    %69 = vector.broadcast %cst_13 : f32 to vector<2x8xf32>
    %70 = arith.mulf %66, %69 : vector<2x8xf32>
    %71 = arith.addf %53, %70 : vector<2x8xf32>
    %72 = arith.cmpf oge, %9, %11 : vector<2x8xf32>
    %73 = arith.extui %72 : vector<2x8xi1> to vector<2x8xi32>
    %74 = arith.sitofp %73 : vector<2x8xi32> to vector<2x8xf32>
    %c2_i32_14 = arith.constant 2 : i32
    %75 = vector.broadcast %c2_i32_14 : i32 to vector<2x8xi32>
    %76 = arith.cmpi sgt, %3, %75 : vector<2x8xi32>
    %77 = arith.extui %76 : vector<2x8xi1> to vector<2x8xi32>
    %78 = arith.sitofp %77 : vector<2x8xi32> to vector<2x8xf32>
    %79 = arith.mulf %74, %78 : vector<2x8xf32>
    %80 = arith.addf %62, %79 : vector<2x8xf32>
    %81 = arith.subf %23, %68 : vector<2x8xf32>
    %82 = arith.mulf %71, %81 : vector<2x8xf32>
    %cst_15 = arith.constant dense<0.000000e+00> : vector<2xf32>
    %83 = vector.multi_reduction <add>, %82, %cst_15 [1] : vector<2x8xf32> to vector<2xf32>
    %84 = vector.shape_cast %83 : vector<2xf32> to vector<2x1xf32>
    %cst_16 = arith.constant dense<0.000000e+00> : vector<1xf32>
    %85 = vector.multi_reduction <add>, %84, %cst_16 [0] : vector<2x1xf32> to vector<1xf32>
    %86 = vector.shape_cast %85 : vector<1xf32> to vector<1x1xf32>
    %87 = vector.extract %86[0, 0] : f32 from vector<1x1xf32>
    %cst_17 = arith.constant dense<0.000000e+00> : vector<2xf32>
    %88 = vector.multi_reduction <add>, %71, %cst_17 [1] : vector<2x8xf32> to vector<2xf32>
    %89 = vector.shape_cast %88 : vector<2xf32> to vector<2x1xf32>
    %cst_18 = arith.constant dense<0.000000e+00> : vector<1xf32>
    %90 = vector.multi_reduction <add>, %89, %cst_18 [0] : vector<2x1xf32> to vector<1xf32>
    %91 = vector.shape_cast %90 : vector<1xf32> to vector<1x1xf32>
    %92 = vector.extract %91[0, 0] : f32 from vector<1x1xf32>
    %93 = arith.divf %87, %92 : f32
    %94 = arith.index_cast %arg0 : i32 to index
    %c0_19 = arith.constant 0 : index
    %95 = memref.load %arg8[%94, %c0_19] : memref<2x8xf32, #tpu.memory_space<smem>>
    memref.store %93, %arg8[%94, %c0_19] : memref<2x8xf32, #tpu.memory_space<smem>>
    %c2_i32_20 = arith.constant 2 : i32
    %96 = vector.broadcast %c2_i32_20 : i32 to vector<2x8xi32>
    %97 = arith.cmpi ne, %3, %96 : vector<2x8xi32>
    %98 = arith.extui %97 : vector<2x8xi1> to vector<2x8xi32>
    %99 = arith.sitofp %98 : vector<2x8xi32> to vector<2x8xf32>
    %100 = arith.cmpf oge, %68, %11 : vector<2x8xf32>
    %101 = arith.extui %100 : vector<2x8xi1> to vector<2x8xi32>
    %102 = arith.sitofp %101 : vector<2x8xi32> to vector<2x8xf32>
    %103 = arith.mulf %99, %102 : vector<2x8xf32>
    %cst_21 = arith.constant 0.000000e+00 : f32
    %104 = vector.broadcast %cst_21 : f32 to vector<2x8xf32>
    %105 = arith.cmpf oeq, %80, %104 : vector<2x8xf32>
    %106 = arith.extui %105 : vector<2x8xi1> to vector<2x8xi32>
    %107 = arith.sitofp %106 : vector<2x8xi32> to vector<2x8xf32>
    %108 = arith.mulf %103, %107 : vector<2x8xf32>
    %cst_22 = arith.constant dense<0.000000e+00> : vector<2xf32>
    %109 = vector.multi_reduction <add>, %99, %cst_22 [1] : vector<2x8xf32> to vector<2xf32>
    %110 = vector.shape_cast %109 : vector<2xf32> to vector<2x1xf32>
    %cst_23 = arith.constant dense<0.000000e+00> : vector<1xf32>
    %111 = vector.multi_reduction <add>, %110, %cst_23 [0] : vector<2x1xf32> to vector<1xf32>
    %112 = vector.shape_cast %111 : vector<1xf32> to vector<1x1xf32>
    %113 = vector.extract %112[0, 0] : f32 from vector<1x1xf32>
    %cst_24 = arith.constant dense<0.000000e+00> : vector<2xf32>
    %114 = vector.multi_reduction <add>, %108, %cst_24 [1] : vector<2x8xf32> to vector<2xf32>
    %115 = vector.shape_cast %114 : vector<2xf32> to vector<2x1xf32>
    %cst_25 = arith.constant dense<0.000000e+00> : vector<1xf32>
    %116 = vector.multi_reduction <add>, %115, %cst_25 [0] : vector<2x1xf32> to vector<1xf32>
    %117 = vector.shape_cast %116 : vector<1xf32> to vector<1x1xf32>
    %118 = vector.extract %117[0, 0] : f32 from vector<1x1xf32>
    %cst_26 = arith.constant 1.000000e+02 : f32
    %119 = arith.mulf %cst_26, %118 : f32
    %cst_27 = arith.constant 1.000000e+00 : f32
    %120 = arith.maximumf %113, %cst_27 : f32
    %121 = arith.divf %119, %120 : f32
    %cst_28 = arith.constant 1.000000e+02 : f32
    %122 = arith.subf %cst_28, %121 : f32
    %123 = arith.index_cast %arg0 : i32 to index
    %c1 = arith.constant 1 : index
    %124 = memref.load %arg8[%123, %c1] : memref<2x8xf32, #tpu.memory_space<smem>>
    memref.store %122, %arg8[%123, %c1] : memref<2x8xf32, #tpu.memory_space<smem>>
    %125 = arith.maximumf %5, %7 : vector<2x8xf32>
    %126 = arith.cmpf oge, %125, %9 : vector<2x8xf32>
    %127 = arith.extui %126 : vector<2x8xi1> to vector<2x8xi32>
    %128 = arith.sitofp %127 : vector<2x8xi32> to vector<2x8xf32>
    %cst_29 = arith.constant dense<0.000000e+00> : vector<2xf32>
    %129 = vector.multi_reduction <add>, %128, %cst_29 [1] : vector<2x8xf32> to vector<2xf32>
    %130 = vector.shape_cast %129 : vector<2xf32> to vector<2x1xf32>
    %c0_30 = arith.constant 0 : index
    %c0_31 = arith.constant 0 : index
    %131 = vector.load %arg3[%c0_30, %c0_31] : memref<2x1xf32, #tpu.memory_space<vmem>>, vector<2x1xf32>
    %132 = arith.subf %130, %131 : vector<2x1xf32>
    %133 = math.absf %132 : vector<2x1xf32>
    %cst_32 = arith.constant dense<0.000000e+00> : vector<2xf32>
    %134 = vector.multi_reduction <add>, %133, %cst_32 [1] : vector<2x1xf32> to vector<2xf32>
    %135 = vector.shape_cast %134 : vector<2xf32> to vector<2x1xf32>
    %cst_33 = arith.constant dense<0.000000e+00> : vector<1xf32>
    %136 = vector.multi_reduction <add>, %135, %cst_33 [0] : vector<2x1xf32> to vector<1xf32>
    %137 = vector.shape_cast %136 : vector<1xf32> to vector<1x1xf32>
    %138 = vector.extract %137[0, 0] : f32 from vector<1x1xf32>
    %cst_34 = arith.constant 2.000000e+00 : f32
    %139 = arith.divf %138, %cst_34 : f32
    %140 = arith.index_cast %arg0 : i32 to index
    %c2 = arith.constant 2 : index
    %141 = memref.load %arg8[%140, %c2] : memref<2x8xf32, #tpu.memory_space<smem>>
    memref.store %139, %arg8[%140, %c2] : memref<2x8xf32, #tpu.memory_space<smem>>
    %c0_35 = arith.constant 0 : index
    %c0_36 = arith.constant 0 : index
    %c0_37 = arith.constant 0 : index
    %142 = vector.load %arg4[%c0_35, %c0_36, %c0_37] : memref<1x4x8xf32, #tpu.memory_space<vmem>>, vector<1x4x8xf32>
    %143 = vector.shape_cast %142 : vector<1x4x8xf32> to vector<4x8xf32>
    %c0_38 = arith.constant 0 : index
    %c0_39 = arith.constant 0 : index
    %c0_40 = arith.constant 0 : index
    %144 = vector.load %arg5[%c0_38, %c0_39, %c0_40] : memref<1x4x8xf32, #tpu.memory_space<vmem>>, vector<1x4x8xf32>
    %145 = vector.shape_cast %144 : vector<1x4x8xf32> to vector<4x8xf32>
    %146 = arith.subf %143, %145 : vector<4x8xf32>
    %147 = math.absf %146 : vector<4x8xf32>
    %cst_41 = arith.constant dense<0.000000e+00> : vector<4xf32>
    %148 = vector.multi_reduction <add>, %147, %cst_41 [1] : vector<4x8xf32> to vector<4xf32>
    %149 = vector.shape_cast %148 : vector<4xf32> to vector<4x1xf32>
    %cst_42 = arith.constant dense<0.000000e+00> : vector<1xf32>
    %150 = vector.multi_reduction <add>, %149, %cst_42 [0] : vector<4x1xf32> to vector<1xf32>
    %151 = vector.shape_cast %150 : vector<1xf32> to vector<1x1xf32>
    %152 = vector.extract %151[0, 0] : f32 from vector<1x1xf32>
    %cst_43 = arith.constant 8.000000e+00 : f32
    %153 = arith.divf %152, %cst_43 : f32
    %154 = arith.index_cast %arg0 : i32 to index
    %c3 = arith.constant 3 : index
    %155 = memref.load %arg8[%154, %c3] : memref<2x8xf32, #tpu.memory_space<smem>>
    memref.store %153, %arg8[%154, %c3] : memref<2x8xf32, #tpu.memory_space<smem>>
    %156 = vector.extract_strided_slice %143 {offsets = [0, 0], sizes = [1, 8], strides = [1, 1]} : vector<4x8xf32> to vector<1x8xf32>
    %157 = vector.extract_strided_slice %143 {offsets = [1, 0], sizes = [1, 8], strides = [1, 1]} : vector<4x8xf32> to vector<1x8xf32>
    %158 = vector.extract_strided_slice %143 {offsets = [2, 0], sizes = [1, 8], strides = [1, 1]} : vector<4x8xf32> to vector<1x8xf32>
    %159 = vector.extract_strided_slice %143 {offsets = [3, 0], sizes = [1, 8], strides = [1, 1]} : vector<4x8xf32> to vector<1x8xf32>
    %160 = vector.extract_strided_slice %145 {offsets = [0, 0], sizes = [1, 8], strides = [1, 1]} : vector<4x8xf32> to vector<1x8xf32>
    %161 = vector.extract_strided_slice %145 {offsets = [1, 0], sizes = [1, 8], strides = [1, 1]} : vector<4x8xf32> to vector<1x8xf32>
    %162 = vector.extract_strided_slice %145 {offsets = [2, 0], sizes = [1, 8], strides = [1, 1]} : vector<4x8xf32> to vector<1x8xf32>
    %163 = vector.extract_strided_slice %145 {offsets = [3, 0], sizes = [1, 8], strides = [1, 1]} : vector<4x8xf32> to vector<1x8xf32>
    %cst_44 = arith.constant 5.000000e-01 : f32
    %164 = vector.broadcast %cst_44 : f32 to vector<1x8xf32>
    %165 = arith.mulf %164, %158 : vector<1x8xf32>
    %166 = arith.subf %156, %165 : vector<1x8xf32>
    %cst_45 = arith.constant 5.000000e-01 : f32
    %167 = vector.broadcast %cst_45 : f32 to vector<1x8xf32>
    %168 = arith.mulf %167, %159 : vector<1x8xf32>
    %169 = arith.subf %157, %168 : vector<1x8xf32>
    %cst_46 = arith.constant 5.000000e-01 : f32
    %170 = vector.broadcast %cst_46 : f32 to vector<1x8xf32>
    %171 = arith.mulf %170, %158 : vector<1x8xf32>
    %172 = arith.addf %156, %171 : vector<1x8xf32>
    %cst_47 = arith.constant 5.000000e-01 : f32
    %173 = vector.broadcast %cst_47 : f32 to vector<1x8xf32>
    %174 = arith.mulf %173, %159 : vector<1x8xf32>
    %175 = arith.addf %157, %174 : vector<1x8xf32>
    %cst_48 = arith.constant 5.000000e-01 : f32
    %176 = vector.broadcast %cst_48 : f32 to vector<1x8xf32>
    %177 = arith.mulf %176, %162 : vector<1x8xf32>
    %178 = arith.subf %160, %177 : vector<1x8xf32>
    %cst_49 = arith.constant 5.000000e-01 : f32
    %179 = vector.broadcast %cst_49 : f32 to vector<1x8xf32>
    %180 = arith.mulf %179, %163 : vector<1x8xf32>
    %181 = arith.subf %161, %180 : vector<1x8xf32>
    %cst_50 = arith.constant 5.000000e-01 : f32
    %182 = vector.broadcast %cst_50 : f32 to vector<1x8xf32>
    %183 = arith.mulf %182, %162 : vector<1x8xf32>
    %184 = arith.addf %160, %183 : vector<1x8xf32>
    %cst_51 = arith.constant 5.000000e-01 : f32
    %185 = vector.broadcast %cst_51 : f32 to vector<1x8xf32>
    %186 = arith.mulf %185, %163 : vector<1x8xf32>
    %187 = arith.addf %161, %186 : vector<1x8xf32>
    %188 = arith.subf %172, %166 : vector<1x8xf32>
    %189 = arith.subf %175, %169 : vector<1x8xf32>
    %190 = arith.mulf %188, %189 : vector<1x8xf32>
    %191 = arith.subf %184, %178 : vector<1x8xf32>
    %192 = arith.subf %187, %181 : vector<1x8xf32>
    %193 = arith.mulf %191, %192 : vector<1x8xf32>
    %194 = arith.minimumf %172, %184 : vector<1x8xf32>
    %195 = arith.maximumf %166, %178 : vector<1x8xf32>
    %196 = arith.subf %194, %195 : vector<1x8xf32>
    %cst_52 = arith.constant 0.000000e+00 : f32
    %197 = vector.broadcast %cst_52 : f32 to vector<1x8xf32>
    %198 = arith.maximumf %196, %197 : vector<1x8xf32>
    %199 = arith.minimumf %175, %187 : vector<1x8xf32>
    %200 = arith.maximumf %169, %181 : vector<1x8xf32>
    %201 = arith.subf %199, %200 : vector<1x8xf32>
    %cst_53 = arith.constant 0.000000e+00 : f32
    %202 = vector.broadcast %cst_53 : f32 to vector<1x8xf32>
    %203 = arith.maximumf %201, %202 : vector<1x8xf32>
    %204 = arith.mulf %198, %203 : vector<1x8xf32>
    %205 = arith.addf %190, %193 : vector<1x8xf32>
    %206 = arith.subf %205, %204 : vector<1x8xf32>
    %cst_54 = arith.constant 1.000000e-07 : f32
    %207 = vector.broadcast %cst_54 : f32 to vector<1x8xf32>
    %208 = arith.maximumf %206, %207 : vector<1x8xf32>
    %209 = arith.divf %204, %208 : vector<1x8xf32>
    %210 = arith.maximumf %172, %184 : vector<1x8xf32>
    %211 = arith.minimumf %166, %178 : vector<1x8xf32>
    %212 = arith.subf %210, %211 : vector<1x8xf32>
    %cst_55 = arith.constant 0.000000e+00 : f32
    %213 = vector.broadcast %cst_55 : f32 to vector<1x8xf32>
    %214 = arith.maximumf %212, %213 : vector<1x8xf32>
    %215 = arith.maximumf %175, %187 : vector<1x8xf32>
    %216 = arith.minimumf %169, %181 : vector<1x8xf32>
    %217 = arith.subf %215, %216 : vector<1x8xf32>
    %cst_56 = arith.constant 0.000000e+00 : f32
    %218 = vector.broadcast %cst_56 : f32 to vector<1x8xf32>
    %219 = arith.maximumf %217, %218 : vector<1x8xf32>
    %220 = arith.mulf %214, %219 : vector<1x8xf32>
    %221 = arith.subf %220, %206 : vector<1x8xf32>
    %cst_57 = arith.constant 1.000000e-07 : f32
    %222 = vector.broadcast %cst_57 : f32 to vector<1x8xf32>
    %223 = arith.maximumf %220, %222 : vector<1x8xf32>
    %224 = arith.divf %221, %223 : vector<1x8xf32>
    %225 = arith.subf %209, %224 : vector<1x8xf32>
    %cst_58 = arith.constant 1.000000e+00 : f32
    %226 = vector.broadcast %cst_58 : f32 to vector<1x8xf32>
    %227 = arith.subf %226, %225 : vector<1x8xf32>
    %cst_59 = arith.constant dense<0.000000e+00> : vector<1xf32>
    %228 = vector.multi_reduction <add>, %227, %cst_59 [1] : vector<1x8xf32> to vector<1xf32>
    %229 = vector.shape_cast %228 : vector<1xf32> to vector<1x1xf32>
    %cst_60 = arith.constant dense<0.000000e+00> : vector<1xf32>
    %230 = vector.multi_reduction <add>, %229, %cst_60 [0] : vector<1x1xf32> to vector<1xf32>
    %231 = vector.shape_cast %230 : vector<1xf32> to vector<1x1xf32>
    %232 = vector.extract %231[0, 0] : f32 from vector<1x1xf32>
    %cst_61 = arith.constant 8.000000e+00 : f32
    %233 = arith.divf %232, %cst_61 : f32
    %234 = arith.index_cast %arg0 : i32 to index
    %c4 = arith.constant 4 : index
    %235 = memref.load %arg8[%234, %c4] : memref<2x8xf32, #tpu.memory_space<smem>>
    memref.store %233, %arg8[%234, %c4] : memref<2x8xf32, #tpu.memory_space<smem>>
    %c0_62 = arith.constant 0 : index
    %c0_63 = arith.constant 0 : index
    %c0_64 = arith.constant 0 : index
    %236 = vector.load %arg6[%c0_62, %c0_63, %c0_64] : memref<1x8x32xf32, #tpu.memory_space<vmem>>, vector<1x8x32xf32>
    %237 = vector.shape_cast %236 : vector<1x8x32xf32> to vector<8x32xf32>
    %c0_65 = arith.constant 0 : index
    %c0_66 = arith.constant 0 : index
    %c0_67 = arith.constant 0 : index
    %238 = vector.load %arg7[%c0_65, %c0_66, %c0_67] : memref<1x8x32xf32, #tpu.memory_space<vmem>>, vector<1x8x32xf32>
    %239 = vector.shape_cast %238 : vector<1x8x32xf32> to vector<8x32xf32>
    %240 = arith.mulf %237, %237 : vector<8x32xf32>
    %cst_68 = arith.constant dense<0.000000e+00> : vector<8xf32>
    %241 = vector.multi_reduction <add>, %240, %cst_68 [1] : vector<8x32xf32> to vector<8xf32>
    %242 = vector.shape_cast %241 : vector<8xf32> to vector<8x1xf32>
    %243 = math.sqrt %242 : vector<8x1xf32>
    %cst_69 = arith.constant 9.99999996E-13 : f32
    %244 = vector.broadcast %cst_69 : f32 to vector<8x1xf32>
    %245 = arith.maximumf %243, %244 : vector<8x1xf32>
    %246 = vector.broadcast %245 : vector<8x1xf32> to vector<8x32xf32>
    %247 = arith.divf %237, %246 : vector<8x32xf32>
    %248 = arith.mulf %239, %239 : vector<8x32xf32>
    %cst_70 = arith.constant dense<0.000000e+00> : vector<8xf32>
    %249 = vector.multi_reduction <add>, %248, %cst_70 [1] : vector<8x32xf32> to vector<8xf32>
    %250 = vector.shape_cast %249 : vector<8xf32> to vector<8x1xf32>
    %251 = math.sqrt %250 : vector<8x1xf32>
    %cst_71 = arith.constant 9.99999996E-13 : f32
    %252 = vector.broadcast %cst_71 : f32 to vector<8x1xf32>
    %253 = arith.maximumf %251, %252 : vector<8x1xf32>
    %254 = vector.broadcast %253 : vector<8x1xf32> to vector<8x32xf32>
    %255 = arith.divf %239, %254 : vector<8x32xf32>
    %256 = arith.subf %247, %255 : vector<8x32xf32>
    %257 = arith.mulf %256, %256 : vector<8x32xf32>
    %cst_72 = arith.constant dense<0.000000e+00> : vector<8xf32>
    %258 = vector.multi_reduction <add>, %257, %cst_72 [1] : vector<8x32xf32> to vector<8xf32>
    %259 = vector.shape_cast %258 : vector<8xf32> to vector<8x1xf32>
    %cst_73 = arith.constant dense<0.000000e+00> : vector<1xf32>
    %260 = vector.multi_reduction <add>, %259, %cst_73 [0] : vector<8x1xf32> to vector<1xf32>
    %261 = vector.shape_cast %260 : vector<1xf32> to vector<1x1xf32>
    %262 = vector.extract %261[0, 0] : f32 from vector<1x1xf32>
    %cst_74 = arith.constant 8.000000e+00 : f32
    %263 = arith.divf %262, %cst_74 : f32
    %264 = arith.index_cast %arg0 : i32 to index
    %c5 = arith.constant 5 : index
    %265 = memref.load %arg8[%264, %c5] : memref<2x8xf32, #tpu.memory_space<smem>>
    memref.store %263, %arg8[%264, %c5] : memref<2x8xf32, #tpu.memory_space<smem>>
    %cst_75 = arith.constant 0.000000e+00 : f32
    %266 = arith.index_cast %arg0 : i32 to index
    %c6 = arith.constant 6 : index
    %267 = memref.load %arg8[%266, %c6] : memref<2x8xf32, #tpu.memory_space<smem>>
    memref.store %cst_75, %arg8[%266, %c6] : memref<2x8xf32, #tpu.memory_space<smem>>
    %cst_76 = arith.constant 0.000000e+00 : f32
    %268 = arith.index_cast %arg0 : i32 to index
    %c7 = arith.constant 7 : index
    %269 = memref.load %arg8[%268, %c7] : memref<2x8xf32, #tpu.memory_space<smem>>
    memref.store %cst_76, %arg8[%268, %c7] : memref<2x8xf32, #tpu.memory_space<smem>>
    return
  }
  func.func @transform_0(%arg0: i32) -> (i32, i32, i32, i32) {
    %c0_i32 = arith.constant 0 : i32
    %c0_i32_0 = arith.constant 0 : i32
    %c0_i32_1 = arith.constant 0 : i32
    %c0_i32_2 = arith.constant 0 : i32
    return %arg0, %c0_i32, %c0_i32_0, %c0_i32_1 : i32, i32, i32, i32
  }
  func.func @transform_1(%arg0: i32) -> (i32, i32, i32) {
    %c0_i32 = arith.constant 0 : i32
    %c0_i32_0 = arith.constant 0 : i32
    %c0_i32_1 = arith.constant 0 : i32
    return %arg0, %c0_i32, %c0_i32_0 : i32, i32, i32
  }
  func.func @transform_2(%arg0: i32) -> (i32, i32) {
    %c0_i32 = arith.constant 0 : i32
    %c0_i32_0 = arith.constant 0 : i32
    %c0_i32_1 = arith.constant 0 : i32
    return %c0_i32, %c0_i32_0 : i32, i32
  }
  func.func @transform_3(%arg0: i32) -> (i32, i32, i32) {
    %c0_i32 = arith.constant 0 : i32
    %c0_i32_0 = arith.constant 0 : i32
    %c0_i32_1 = arith.constant 0 : i32
    return %arg0, %c0_i32, %c0_i32_0 : i32, i32, i32
  }
  func.func @transform_4(%arg0: i32) -> (i32, i32, i32) {
    %c0_i32 = arith.constant 0 : i32
    %c0_i32_0 = arith.constant 0 : i32
    %c0_i32_1 = arith.constant 0 : i32
    %c0_i32_2 = arith.constant 0 : i32
    return %c0_i32, %c0_i32_0, %c0_i32_1 : i32, i32, i32
  }
  func.func @transform_5(%arg0: i32) -> (i32, i32, i32) {
    %c0_i32 = arith.constant 0 : i32
    %c0_i32_0 = arith.constant 0 : i32
    %c0_i32_1 = arith.constant 0 : i32
    return %arg0, %c0_i32, %c0_i32_0 : i32, i32, i32
  }
  func.func @transform_6(%arg0: i32) -> (i32, i32, i32) {
    %c0_i32 = arith.constant 0 : i32
    %c0_i32_0 = arith.constant 0 : i32
    %c0_i32_1 = arith.constant 0 : i32
    %c0_i32_2 = arith.constant 0 : i32
    return %c0_i32, %c0_i32_0, %c0_i32_1 : i32, i32, i32
  }
  func.func @transform_7(%arg0: i32) -> (i32, i32) {
    %c0_i32 = arith.constant 0 : i32
    %c0_i32_0 = arith.constant 0 : i32
    %c0_i32_1 = arith.constant 0 : i32
    return %c0_i32, %c0_i32_0 : i32, i32
  }
}

</mosaic_0001>

<bundles_post_ra>
// kernel: _forward_impl.1
= control target key start
LH: loop header
LB: loop body
LE: loop exit
PB: predicated region body
PF: predicated region fallthrough
CT: control target
= control target key end

     0   :  { %12 = vsyncpa [#allocation3], 0  ;;  %s888_s24 = smov 0   ;;  %s1014_s0 = inlined_call_operand.vmem [shape: f32[2,3,2,8], index: 0, kind: input, shape index: {}]   ;;  %s1015_s1 = inlined_call_operand.vmem [shape: s32[2,2,8], index: 1, kind: input, shape index: {}]   ;;  %s1016_s2 = inlined_call_operand.vmem [shape: f32[2,1], index: 2, kind: input, shape index: {}]   ;;  %s1017_s3 = inlined_call_operand.vmem [shape: f32[2,4,8], index: 3, kind: input, shape index: {}]   ;;  %s1018_s4 = inlined_call_operand.vmem [shape: f32[1,4,8], index: 4, kind: input, shape index: {}]   ;;  %s1019_s5 = inlined_call_operand.vmem [shape: f32[2,8,32], index: 5, kind: input, shape index: {}]   ;;  %s1020_s6 = inlined_call_operand.vmem [shape: f32[1,8,32], index: 6, kind: input, shape index: {}]   ;;  %s1021_s7 = inlined_call_operand.hbm [shape: f32[2,8], index: 7, kind: output, shape index: {}]  }
   0x1 LB: > { %s894_s25 = sadd.s32 4294967295, %s842_s24   ;;  %p727_p0 = scmp.ge.s32.totalorder %s842_s24, 1  ;;  %s842_s24 = sphi %s888_s24, %s18_s24  }
   0x2   : > { %p260_p1 = scmp.lt.s32.totalorder %s842_s24, 3 }
   0x4   : > { %p261_p2 = pnand %p727_p0, %p260_p1 }
   0x5   : > { %p299_p3 = scmp.lt.s32.totalorder (!%p261_p2), %s894_s25, 1  ;;  %v906_v0 = vld [vmem:[%s1020_s6] sm:$0xff] (!%p261_p2)  ;;  %vm568_vm0 = vcmask (!%p261_p2), 261120   ;;  %v844_v19 = vmov (!%p261_p2), 0.0   ;;  %vm382_vm12 = vcmask (!%p261_p2), 58368   ;;  %vm485_vm14 = vcmask (!%p261_p2), 60416  }
   0x6   : > { %264 = sbr.rel (%p261_p2) target bundleno = 415 (0x19f), region = 48  ;;  %v582_v3 = vmul.f32 (!%p261_p2), %v906_v0, %v906_v0  ;;  %v482_v33 = vld [vmem:[%s1018_s4] sm:$0xf] (!%p261_p2)  ;;  %s741_s28 = sshll.u32 (!%p261_p2), %s894_s25, 7 }
   0x7   : > { %v510_v37 = vmul.f32 (!%p261_p2), 0.5, %v482_v33  ;;  %s976_s29 = scalar_lea.smem (!%p261_p2), [#allocation2], %s741_s28  ;;  %s845_s8 = smov (!%p261_p2), 0.0  }
   0x8   : > { %v583_v9 = vsel (!%p261_p2), %vm568_vm0, %v582_v3, 0.0  ;;  %s685_s30 = scalar_lea.smem (!%p261_p2), %s976_s29, 6 [#allocation2]  ;;  %s846_s15 = smov (!%p261_p2), 1.0  }
   0x9   : > { %v512_v58 = vrot.slane (!%p261_p2), %v510_v37, 2  ;;  %616 = sst [smem:[%s685_s30]] (!%p261_p2), %s845_s8  ;;  %s673_s20 = scalar_lea.smem (!%p261_p2), %s976_s29, 2 [#allocation2] }
   0xa   : > { %s679_s22 = scalar_lea.smem (!%p261_p2), %s976_s29, 4 [#allocation2]  ;;  %s682_s23 = scalar_lea.smem (!%p261_p2), %s976_s29, 5 [#allocation2] }
   0xb   : > { %v514_v62 = vsub.f32 (!%p261_p2), %v482_v33, %v512_v58  ;;  %v515_v63 = vadd.f32 (!%p261_p2), %v512_v58, %v482_v33  ;;  %p782_p4 = scmp.eq.s32.totalorder (!%p261_p2), %s894_s25, 1 }
   0xd   : > { %s900_s26 = scalar_select %p299_p3, %s894_s25, 1 }
   0xf   : > { %s731_s27 = sshll.u32 %s900_s26, 3  ;;  %s757_s10 = smul.u32 6, %s900_s26 }
  0x10   : > { %s315_s9 = scalar_lea.vmem %s1019_s5, %s731_s27  ;;  %s729_s14 = sshll.u32 %s900_s26, 1 }
  0x11   : > { %v911_v1 = vld [vmem:[%s315_s9] sm:$0xff]  ;;  %s303_s13 = scalar_lea.vmem %s1014_s0, %s757_s10  ;;  %s307_s17 = scalar_lea.vmem %s1015_s1, %s729_s14 }
  0x12   : > { %v567_v2 = vmul.f32 %v911_v1, %v911_v1  ;;  %v316_v5 = vld [vmem:[%s303_s13] sm:$0x3]  ;;  %v317_v6 = vld [vmem:[%s303_s13 + $0x2] sm:$0x3]  ;;  %v922_v7 = vld [vmem:[%s303_s13 + $0x4] sm:$0x3] }
  0x13   : > { %v924_v8 = vmax.f32 %v316_v5, %v317_v6  ;;  %v319_v17 = vld [vmem:[%s307_s17] sm:$0x3]  ;;  %s730_s18 = sshll.u32 %s900_s26, 2  ;;  %s688_s9 = scalar_lea.smem %s976_s29, 7 [#allocation2] }
  0x14   : > { %v569_v4 = vsel %vm568_vm0, %v567_v2, 0.0  ;;  %vm337_vm1 = vcmp.eq.s32.totalorder %v319_v17, 0  ;;  %vm351_vm2 = vcmp.eq.s32.totalorder %v319_v17, 1  ;;  %vm365_vm3 = vcmp.eq.s32.totalorder %v319_v17, 2  ;;  %s311_s21 = scalar_lea.vmem %s1017_s3, %s730_s18  ;;  %619 = sst [smem:[%s688_s9]] %s845_s8 }
  0x15   : > { %570 = vadd.xlane.f32.xlu1 %v569_v4  ;;  %v321_v10 = vmax.f32 %v924_v8, %v922_v7  ;;  %v732_v20 = vsel %vm337_vm1, 1.0, %v844_v19  ;;  %v735_v21 = vsel %vm351_vm2, 1.0, %v844_v19  ;;  %v738_v28 = vsel %vm365_vm3, 1.0, %v844_v19  ;;  %v481_v32 = vld [vmem:[%s311_s21] sm:$0xf]  ;;  %s670_s18 = scalar_lea.smem %s976_s29, 1 [#allocation2] }
  0x16   : > { %v340_v25 = vmul.f32 %v732_v20, %v316_v5  ;;  %v354_v26 = vmul.f32 %v735_v21, %v317_v6  ;;  %v368_v30 = vmul.f32 %v738_v28, %v922_v7  ;;  %v356_v34 = vadd.f32 %v735_v21, %v732_v20  ;;  %s676_s21 = scalar_lea.smem %s976_s29, 3 [#allocation2] }
  0x17   : > { %v322_v11 = vsub.f32 %v316_v5, %v321_v10  ;;  %v326_v12 = vsub.f32 %v317_v6, %v321_v10  ;;  %v330_v13 = vsub.f32 %v922_v7, %v321_v10  ;;  %vm413_vm4 = vcmp.ne.s32.totalorder %v319_v17, 2 }
  0x18   : > { %v355_v29 = vadd.f32 %v354_v26, %v340_v25  ;;  %v370_v35 = vmul.f32 0.1, %v738_v28  ;;  %v504_v36 = vmul.f32 0.5, %v481_v32  ;;  %vm343_vm6 = vcmp.ge.f32.partialorder %v316_v5, %v321_v10 }
  0x19   : > { %584 = vadd.xlane.f32.xlu1 %v583_v9  ;;  %v323_v14 = vmul.f32 1.442695, %v322_v11  ;;  %v327_v15 = vmul.f32 1.442695, %v326_v12  ;;  %v331_v16 = vmul.f32 1.442695, %v330_v13  ;;  %vm357_vm8 = vcmp.ge.f32.partialorder %v317_v6, %v321_v10 }
  0x1a   : > { %v369_v31 = vadd.f32 %v368_v30, %v355_v29  ;;  %vm346_vm7 = vcmp.gt.s32.totalorder %v319_v17, 0  ;;  %vm360_vm9 = vcmp.gt.s32.totalorder %v319_v17, 1  ;;  %v733_v38 = vsel %vm343_vm6, 1.0, %v844_v19 }
  0x1b   : > { %796 = vpow2.f32 %v323_v14  ;;  %v734_v39 = vsel %vm346_vm7, 1.0, %v844_v19  ;;  %v736_v40 = vsel %vm357_vm8, 1.0, %v844_v19  ;;  %v737_v41 = vsel %vm360_vm9, 1.0, %v844_v19 }
  0x1c   : > { %798 = vpow2.f32 %v327_v15  ;;  %vm416_vm5 = vcmp.ge.f32.partialorder %v369_v31, %v321_v10  ;;  %v349_v43 = vmul.f32 %v734_v39, %v733_v38  ;;  %v363_v44 = vmul.f32 %v737_v41, %v736_v40 }
  0x1d   : > { %800 = vpow2.f32 %v331_v16  ;;  %vm372_vm10 = vcmp.ge.f32.partialorder %v922_v7, %v321_v10  ;;  %vm375_vm11 = vcmp.gt.s32.totalorder %v319_v17, 2  ;;  %v743_v46 = vsel %vm416_vm5, 1.0, %v844_v19 }
  0x1e   : > { %v739_v47 = vsel %vm372_vm10, 1.0, %v844_v19  ;;  %v740_v48 = vsel %vm375_vm11, 1.0, %v844_v19  ;;  %v742_v49 = vsel %vm413_vm4, 1.0, %v844_v19  ;;  %v364_v50 = vadd.f32 %v363_v44, %v349_v43 }
  0x1f   : > { %v378_v51 = vmul.f32 %v740_v48, %v739_v47  ;;  %v371_v53 = vadd.f32 %v370_v35, %v356_v34  ;;  %v483_v54 = vsub.f32 %v481_v32, %v482_v33  ;;  %v506_v55 = vrot.slane %v504_v36, 2 }
  0x20   : > { %v419_v56 = vmul.f32 %v743_v46, %v742_v49  ;;  %v521_v9 = vsub.f32 %v515_v63, %v514_v62  ;;  %vm456_vm15 = vcmp.ge.f32.partialorder %v924_v8, %v922_v7  ;;  %v424_v29 = vsel %vm382_vm12, %v742_v49, 0.0 }
  0x21   : > { %v379_v57 = vadd.f32 %v378_v51, %v364_v50  ;;  %v508_v60 = vsub.f32 %v481_v32, %v506_v55  ;;  %v509_v61 = vadd.f32 %v506_v55, %v481_v32  ;;  %v484_v4 = vand.u32 2147483647, %v483_v54 }
  0x22   : > { %v523_v17 = vrot.slane %v521_v9, 1  ;;  %v395_v20 = vsel %vm382_vm12, %v371_v53, 0.0  ;;  %vm553_vm1 = vcmask 57344   ;;  %vm386_vm6 = vcmask 1041408  }
  0x23   : > { %vm420_vm13 = vcmp.eq.f32.partialorder %v379_v57, 0.0  ;;  %v516_v5 = vsub.f32 %v509_v61, %v508_v60  ;;  %v527_v11 = vmax.f32 %v508_v60, %v514_v62  ;;  %v539_v14 = vmax.f32 %v509_v61, %v515_v63 }
  0x24   : > { %v744_v3 = vsel %vm420_vm13, 1.0, %v844_v19  ;;  %v540_v15 = vmin.f32 %v508_v60, %v514_v62  ;;  %vm489_vm7 = vcmask 1043456  }
  0x25   : > { %v797_v18 = vpop.eup %796  ;;  %v423_v6 = vmul.f32 %v744_v3, %v419_v56  ;;  %v518_v13 = vrot.slane %v516_v5, 1 }
  0x26   : > { %v799_v22 = vpop.eup %798 }
  0x27   : > { %v801_v23 = vpop.eup %800  ;;  %v329_v24 = vadd.f32 %v799_v22, %v797_v18  ;;  %v435_v16 = vsel %vm382_vm12, %v423_v6, 0.0  ;;  %v520_v21 = vmul.f32 %v518_v13, %v516_v5  ;;  %v541_v22 = vsub.f32 %v539_v14, %v540_v15 }
  0x28   : > { %436 = vadd.xlane.f32.xlu1 %v435_v16 }
  0x29   : > { %v333_v27 = vadd.f32 %v801_v23, %v329_v24  ;;  %v486_v23 = vsel %vm485_vm14, %v484_v4, 0.0  ;;  %v525_v24 = vmul.f32 %v523_v17, %v521_v9  ;;  %v542_v26 = vmax.f32 %v541_v22, 0.0 }
  0x2b   : > { %802 = vlog2.f32 %v333_v27  ;;  %v534_v28 = vadd.f32 %v525_v24, %v520_v21  ;;  %v544_v30 = vrot.slane %v542_v26, 1 }
  0x2c   : > { %487 = vadd.xlane.f32.xlu1 %v486_v23 }
  0x2d   : > { %v546_v33 = vmul.f32 %v544_v30, %v542_v26 }
  0x2f   : > { %v548_v36 = vmax.f32 %v546_v33, 1e-07 }
  0x31   : > { %804 = vrcp.f32 %v548_v36 }
  0x35   : > { %v803_v42 = vpop.eup %802 }
  0x36   : > { %v335_v45 = vmul.f32 0.6931472, %v803_v42 }
  0x38   : > { %v336_v52 = vadd.f32 %v335_v45, %v321_v10  ;;  %v526_v10 = vmin.f32 %v509_v61, %v515_v63 }
  0x3a   : > { %v380_v59 = vsub.f32 %v336_v52, %v369_v31  ;;  %v528_v18 = vsub.f32 %v526_v10, %v527_v11  ;;  %v746_v31 = vsel %vm456_vm15, 1.0, %v844_v19 }
  0x3b   : > { %v459_v35 = vsel %vm382_vm12, %v746_v31, 0.0  ;;  %v805_v8 = vpop.eup %804 }
  0x3c   : > { %v381_v2 = vmul.f32 %v380_v59, %v371_v53  ;;  %v529_v25 = vmax.f32 %v528_v18, 0.0 }
  0x3e   : > { %v383_v12 = vsel %vm382_vm12, %v381_v2, 0.0  ;;  %v531_v27 = vrot.slane %v529_v25, 1 }
  0x3f   : > { %384 = vadd.xlane.f32.xlu0 %v383_v12 }
  0x40   : > { %v533_v32 = vmul.f32 %v531_v27, %v529_v25 }
  0x42   : > { %v535_v34 = vsub.f32 %v534_v28, %v533_v32 }
  0x43   : > { %396 = vadd.xlane.f32.xlu0 %v395_v20 }
  0x44   : > { %v536_v37 = vmax.f32 %v535_v34, 1e-07  ;;  %v547_v7 = vsub.f32 %v546_v33, %v535_v34 }
  0x46   : > { %806 = vrcp.f32 %v536_v37  ;;  %v550_v39 = vmul.f32 %v805_v8, %v547_v7  ;;  %v462_v37 = vld [vmem:[%s1016_s2] sm:$0x3] }
  0x47   : > { %425 = vadd.xlane.f32.xlu0 %v424_v29 }
  0x4b   : > { %460 = vadd.xlane.f32.xlu0 %v459_v35 }
  0x50   : > { %v807_v38 = vpop.eup %806 }
  0x51   : > { %v538_v40 = vmul.f32 %v807_v38, %v533_v32 }
  0x53   : > { %v551_v41 = vsub.f32 %v538_v40, %v550_v39 }
  0x55   : > { %v552_v42 = vsub.f32 1.0, %v551_v41 }
  0x57   : > { %v554_v19 = vsel %vm553_vm1, %v552_v42, 0.0 }
  0x58   : > { %555 = vadd.xlane.f32.xlu1 %v554_v19 }
  0xa2   : > { %v571_v43 = vpop.xlane.xlu1 %570 }
  0xa3   : > { %808 = vrsqrt.f32 %v571_v43  ;;  %vm574_vm2 = vcmp.eq.f32.partialorder %v571_v43, inf  ;;  %v577_v47 = vand.u32 2147483648, %v571_v43  ;;  %vm576_vm3 = vcmp.eq.f32.partialorder %v571_v43, 0.0 }
  0xa6   : > { %v585_v44 = vpop.xlane.xlu1 %584 }
  0xa7   : > { %810 = vrsqrt.f32 %v585_v44  ;;  %vm588_vm4 = vcmp.eq.f32.partialorder %v585_v44, inf  ;;  %v591_v53 = vand.u32 2147483648, %v585_v44  ;;  %vm590_vm5 = vcmp.eq.f32.partialorder %v585_v44, 0.0 }
  0xad   : > { %v809_v45 = vpop.eup %808 }
  0xae   : > { %v573_v46 = vmul.f32 %v809_v45, %v571_v43 }
  0xb0   : > { %v575_v48 = vsel %vm574_vm2, %v571_v43, %v573_v46 }
  0xb1   : > { %v811_v49 = vpop.eup %810  ;;  %v578_v50 = vsel %vm576_vm3, %v577_v47, %v575_v48 }
  0xb2   : > { %v579_v51 = vmax.f32 %v578_v50, 1e-12  ;;  %v587_v52 = vmul.f32 %v811_v49, %v585_v44 }
  0xb4   : > { %v589_v54 = vsel %vm588_vm4, %v585_v44, %v587_v52  ;;  %812 = vrcp.f32 %v579_v51 }
  0xb5   : > { %v592_v55 = vsel %vm590_vm5, %v591_v53, %v589_v54  ;;  %v437_v20 = vpop.xlane.xlu1 %436 }
  0xb6   : > { %v593_v56 = vmax.f32 %v592_v55, 1e-12  ;;  %v438_v22 = vsel %vm386_vm6, %v437_v20, 0.0 }
  0xb7   : > { %v439_v24 = vrot.slane %v438_v22, 4 }
  0xb8   : > { %814 = vrcp.f32 %v593_v56 }
  0xb9   : > { %v440_v26 = vadd.f32 %v439_v24, %v438_v22  ;;  %v488_v39 = vpop.xlane.xlu1 %487 }
  0xba   : > { %v490_v41 = vsel %vm489_vm7, %v488_v39, 0.0 }
  0xbb   : > { %v441_v28 = vrot.slane %v440_v26, 2  ;;  %v491_v19 = vrot.slane %v490_v41, 4 }
  0xbd   : > { %v442_v31 = vadd.f32 %v441_v28, %v440_v26  ;;  %v492_v44 = vadd.f32 %v491_v19, %v490_v41 }
  0xbe   : > { %v813_v57 = vpop.eup %812 }
  0xbf   : > { %v581_v59 = vmul.f32 %v813_v57, %v911_v1  ;;  %v443_v33 = vrot.slane %v442_v31, 1  ;;  %v493_v46 = vrot.slane %v492_v44, 2 }
  0xc1   : > { %v444_v35 = vadd.f32 %v443_v33, %v442_v31  ;;  %v494_v49 = vadd.f32 %v493_v46, %v492_v44 }
  0xc2   : > { %v815_v58 = vpop.eup %814 }
  0xc3   : > { %v595_v60 = vmul.f32 %v815_v58, %v906_v0  ;;  %v495_v53 = vrot.slane %v494_v49, 1 }
  0xc5   : > { %v596_v61 = vsub.f32 %v581_v59, %v595_v60  ;;  %v496_v57 = vadd.f32 %v495_v53, %v494_v49 }
  0xc7   : > { %v597_v62 = vmul.f32 %v596_v61, %v596_v61 }
  0xc9   : > { %v598_v63 = vsel %vm568_vm0, %v597_v62, 0.0  ;;  %vm466_vm0 = vcmask 1024  }
  0xca   : > { %599 = vadd.xlane.f32.xlu0 %v598_v63 }
  0xcc   : > { %v385_v2 = vpop.xlane.xlu0 %384 }
  0xcd   : > { %v387_v3 = vsel %vm386_vm6, %v385_v2, 0.0 }
  0xce   : > { %v388_v4 = vrot.slane %v387_v3, 4 }
  0xd0   : > { %v389_v5 = vadd.f32 %v388_v4, %v387_v3  ;;  %v397_v6 = vpop.xlane.xlu0 %396 }
  0xd1   : > { %v398_v9 = vsel %vm386_vm6, %v397_v6, 0.0 }
  0xd2   : > { %v390_v10 = vrot.slane %v389_v5, 2  ;;  %v399_v11 = vrot.slane %v398_v9, 4 }
  0xd4   : > { %v400_v12 = vadd.f32 %v399_v11, %v398_v9  ;;  %v391_v1 = vadd.f32 %v390_v10, %v389_v5  ;;  %v426_v18 = vpop.xlane.xlu0 %425 }
  0xd5   : > { %v427_v21 = vsel %vm386_vm6, %v426_v18, 0.0 }
  0xd6   : > { %v401_v13 = vrot.slane %v400_v12, 2  ;;  %v392_v0 = vrot.slane %v391_v1, 1  ;;  %v428_v23 = vrot.slane %v427_v21, 4 }
  0xd8   : > { %v393_v14 = vadd.f32 %v392_v0, %v391_v1  ;;  %v402_v15 = vadd.f32 %v401_v13, %v400_v12  ;;  %v429_v25 = vadd.f32 %v428_v23, %v427_v21  ;;  %v461_v7 = vpop.xlane.xlu0 %460 }
  0xd9   : > { %v463_v8 = vsub.f32 %v461_v7, %v462_v37 }
  0xda   : > { %758 = vpush %v393_v14  ;;  %v403_v16 = vrot.slane %v402_v15, 1  ;;  %v430_v27 = vrot.slane %v429_v25, 2 }
  0xdb   : > { %v464_v38 = vand.u32 2147483647, %v463_v8 }
  0xdc   : > { %v404_v17 = vadd.f32 %v403_v16, %v402_v15  ;;  %v431_v30 = vadd.f32 %v430_v27, %v429_v25 }
  0xdd   : > { %v467_v40 = vsel %vm466_vm0, %v464_v38, 0.0 }
  0xde   : > { %760 = vpush %v404_v17  ;;  %v432_v32 = vrot.slane %v431_v30, 1  ;;  %v468_v42 = vrot.slane %v467_v40, 4 }
  0xe0   : > { %v433_v34 = vadd.f32 %v432_v32, %v431_v30  ;;  %v469_v43 = vadd.f32 %v468_v42, %v467_v40 }
  0xe2   : > { %v470_v45 = vrot.slane %v469_v43, 2 }
  0xe4   : > { %v471_v48 = vadd.f32 %v470_v45, %v469_v43 }
  0xe5   : > { %v556_v60 = vpop.xlane.xlu1 %555 }
  0xe6   : > { %v472_v51 = vrot.slane %v471_v48, 1 }
  0xe8   : > { %v473_v55 = vadd.f32 %v472_v51, %v471_v48 }
 0x10b   : > { %s973_s26 = spop %758 }
 0x10f   : > { %s761_s27 = spop %760 }
 0x110   : > { %v406_v29 = vstv %s761_s27 }
 0x111   : > { %816 = vrcp.f32 %v406_v29 }
 0x11b   : > { %v817_v36 = vpop.eup %816 }
 0x11c   : > { %762 = vpush %v817_v36 }
 0x11d   : > { %764 = vpush %v433_v34 }
 0x11e   : > { %766 = vpush %v444_v35 }
 0x14d   : > { %s763_s12 = spop %762 }
 0x14e   : > { %s409_s13 = smul.f32 %s763_s12, %s973_s26  ;;  %s765_s14 = spop %764 }
 0x14f   : > { %s447_s16 = smax.f32 %s846_s15, %s765_s14  ;;  %s767_s17 = spop %766 }
 0x150   : > { %412 = sst [smem:[%s976_s29]] %s409_s13  ;;  %v448_v47 = vstv %s447_s16  ;;  %s446_s19 = smul.f32 100.0, %s767_s17 }
 0x151   : > { %818 = vrcp.f32 %v448_v47  ;;  %s820_s16 = scalar_lea.hbm %s1021_s7, 32 }
 0x152   : > { %p821_p5 = scmp.ne.s32.totalorder %s1021_s7, %s820_s16  ;;  %p826_p8 = scmp.lt.u32.totalorder %s820_s16, %s1021_s7 }
 0x154   : > { %p822_p6 = pnand %p821_p5, %p782_p4 }
 0x156   : > { %p823_p7 = pneg %p822_p6 }
 0x157   : > { %v600_v50 = vpop.xlane.xlu0 %599 }
 0x158   : > { %v601_v52 = vrot.slane %v600_v50, 4  ;;  %p828_p9 = pnand %p826_p8, %p823_p7 }
 0x15a   : > { %v602_v54 = vadd.f32 %v601_v52, %v600_v50 }
 0x15b   : > { %v819_v58 = vpop.eup %818 }
 0x15c   : > { %v603_v56 = vrot.slane %v602_v54, 2  ;;  %768 = vpush %v819_v58 }
 0x15d   : > { %770 = vpush %v473_v55 }
 0x15e   : > { %v604_v59 = vadd.f32 %v603_v56, %v602_v54  ;;  %772 = vpush %v496_v57 }
 0x15f   : > { %774 = vpush %v556_v60 }
 0x160   : > { %v605_v61 = vrot.slane %v604_v59, 1 }
 0x162   : > { %v606_v62 = vadd.f32 %v605_v61, %v604_v59 }
 0x164   : > { %776 = vpush %v606_v62 }
 0x18d   : > { %s769_s26 = spop %768 }
 0x18e   : > { %s451_s27 = smul.f32 %s769_s26, %s446_s19  ;;  %s771_s28 = spop %770 }
 0x18f   : > { %s477_s30 = smul.f32 0.5, %s771_s28  ;;  %s773_s8 = spop %772 }
 0x190   : > { %s452_s9 = ssub.f32 100.0, %s451_s27  ;;  %s500_s10 = smul.f32 0.125, %s773_s8 }
 0x191   : > { %480 = sst [smem:[%s673_s20]] %s477_s30  ;;  %s775_s11 = spop %774 }
 0x192   : > { %455 = sst [smem:[%s670_s18]] %s452_s9  ;;  %s561_s12 = smul.f32 0.125, %s775_s11 }
 0x193   : > { %503 = sst [smem:[%s676_s21]] %s500_s10 }
 0x194   : > { %564 = sst [smem:[%s679_s22]] %s561_s12 }
 0x195   : > { %s777_s13 = spop %776 }
 0x196   : > { %s610_s14 = smul.f32 0.125, %s777_s13 }
 0x198   : > { %613 = sst [smem:[%s682_s23]] %s610_s14 }
 0x199   : > { %831 = shalt.err (!%p828_p9)
}
 0x19a   : > { %s847_s18 = smov [#allocation2]  }
 0x19b   : > { %779 = dma.smem_to_hbm (%p782_p4), %s847_s18, 32, %s1021_s7, [#allocation3]  }
 0x19c   : > { %837 = dma.done.wait (%p782_p4), [#allocation3], 32  }
 0x19d   : > { %839 = vsyncadd (%p782_p4), [#allocation3], 4294967264 }
 0x19e   : > { %633 = sfence }
 0x19f PF: > { %s18_s24 = sadd.s32 1, %s842_s24  }
 0x1a0   : > { %p15_p10 = scmp.ge.s32.totalorder %s18_s24, 4  }
 0x1a2   :  { %17 = sbr.rel (!%p15_p10) target bundleno = 1 (0x1), region = 92 }
 0x1a9   :  { %639 = vsyncpa [#allocation3], 1 }
 0x1aa   :  { %641 = vsyncpa [#allocation3 + $0x1], 1 }

</bundles_post_ra>
